<compile_context>
chip_gen: v5e
topology: v5e:2x2
jax: 0.10.0
libtpu: 0.0.40
codegen_flags: <defaults>
</compile_context>

<pallas_src>
import jax
import jax.numpy as jnp
from jax.experimental import pallas as pl
from jax.experimental.pallas import tpu as pltpu


def _linear_probe_kernel(b_ref, x_ref, w_ref, o_ref):
    # b_ref: (1,) f32 in SMEM (scalar-prefetched bias)
    # x_ref: (TB, D) VMEM tile, w_ref: (1, D) VMEM (resident), o_ref: (TB, 1)
    x = x_ref[...].astype(jnp.float32)          # (TB, D)
    w = w_ref[...].astype(jnp.float32)          # (1, D) -> broadcasts over rows
    acc = jnp.sum(x * w, axis=-1, keepdims=True)  # VPU mul + XLU lane reduce
    o_ref[...] = (acc + b_ref[0]).astype(o_ref.dtype)


def linear_probe(x, weight, bias, *, target_tile_bytes=4 * 1024 * 1024):
    """x: (B, D); weight: (1, D) (PyTorch nn.Linear convention); bias: (1,)."""
    B, D = x.shape
    dtype_bytes = jnp.dtype(x.dtype).itemsize

    # Choose a batch tile: ~4 MiB of x per buffer, multiple of 8 sublanes,
    # never larger than the (8-aligned) batch itself.
    tb = target_tile_bytes // max(1, D * dtype_bytes)
    tb = max(8, min(tb, 1024))
    tb = (tb // 8) * 8
    b_aligned = ((B + 7) // 8) * 8
    tb = min(tb, b_aligned)

    # Pad batch to a multiple of the tile (zero rows; sliced off afterwards).
    padded_b = ((B + tb - 1) // tb) * tb
    if padded_b != B:
        x = jnp.pad(x, ((0, padded_b - B), (0, 0)))

    w = weight.astype(x.dtype)            # (1, D), no transpose needed
    b = bias.astype(jnp.float32)          # (1,), scalar-prefetched into SMEM

    grid = (padded_b // tb,)
    out = pl.pallas_call(
        _linear_probe_kernel,
        out_shape=jax.ShapeDtypeStruct((padded_b, 1), x.dtype),
        grid_spec=pltpu.PrefetchScalarGridSpec(
            num_scalar_prefetch=1,
            grid=grid,
            in_specs=[
                # x: stream one (TB, D) tile per grid step (double-buffered).
                pl.BlockSpec((tb, D), lambda i, b_sref: (i, 0)),
                # weight: same block every step -> stays VMEM-resident.
                pl.BlockSpec((1, D), lambda i, b_sref: (0, 0)),
            ],
            out_specs=pl.BlockSpec((tb, 1), lambda i, b_sref: (i, 0)),
        ),
        compiler_params=pltpu.CompilerParams(
            dimension_semantics=("parallel",),   # independent batch tiles
            vmem_limit_bytes=32 * 1024 * 1024,
        ),
    )(b, x, w)
    return out[:B]


if __name__ == "__main__":
    key = jax.random.PRNGKey(0)
    kx, kw, kb, kx2 = jax.random.split(key, 4)

    # Small demo shape consistent with the module.
    batch, input_dim = 8, 32
    x = jax.random.normal(kx, (batch, input_dim), dtype=jnp.float32)

    # Deterministic parameter init (mimics nn.Linear uniform(-1/sqrt(D), 1/sqrt(D))).
    bound = 1.0 / jnp.sqrt(jnp.float32(input_dim))
    weight = jax.random.uniform(kw, (1, input_dim), minval=-bound, maxval=bound,
                                dtype=jnp.float32)
    bias = jax.random.uniform(kb, (1,), minval=-bound, maxval=bound,
                              dtype=jnp.float32)

    out = linear_probe(x, weight, bias)
    out = jax.block_until_ready(out)
    ref = x @ weight.T + bias
    assert out.shape == (batch, 1)
    assert jnp.allclose(out, ref, atol=1e-4, rtol=1e-4)

    # Second check: batch not divisible by the tile (exercises pad + slice path).
    batch2, dim2 = 100, 512
    x2 = jax.random.normal(kx2, (batch2, dim2), dtype=jnp.float32)
    bound2 = 1.0 / jnp.sqrt(jnp.float32(dim2))
    w2 = jax.random.uniform(kw, (1, dim2), minval=-bound2, maxval=bound2,
                            dtype=jnp.float32)
    b2 = jax.random.uniform(kb, (1,), minval=-bound2, maxval=bound2,
                            dtype=jnp.float32)
    out2 = jax.block_until_ready(linear_probe(x2, w2, b2))
    ref2 = x2 @ w2.T + b2
    assert out2.shape == (batch2, 1)
    assert jnp.allclose(out2, ref2, atol=1e-4, rtol=1e-4)

    print("KERNEL_OK")
</pallas_src>

<mosaic_0001>
module attributes {stable_mosaic.version = 11 : i64} {
  func.func @_linear_probe_kernel(%arg0: i32, %arg1: memref<1xf32, #tpu.memory_space<smem>>, %arg2: memref<8x32xf32, #tpu.memory_space<vmem>>, %arg3: memref<1x32xf32, #tpu.memory_space<vmem>>, %arg4: memref<8x1xf32, #tpu.memory_space<vmem>>) attributes {dimension_semantics = [#tpu.dimension_semantics<parallel>], iteration_bounds = array<i64: 1>, scalar_prefetch = 1 : i64, scratch_operands = 0 : i64, tpu.core_type = #tpu.core_type<tc>, window_params = [{transform_indices = @transform_0, window_bounds = array<i64: 8, 32>}, {pipeline_mode = #tpu.pipeline_mode<synchronous>, transform_indices = @transform_1, window_bounds = array<i64: 1, 32>}, {transform_indices = @transform_2, window_bounds = array<i64: 8, 1>}]} {
    %c0 = arith.constant 0 : index
    %c0_0 = arith.constant 0 : index
    %0 = vector.load %arg2[%c0, %c0_0] : memref<8x32xf32, #tpu.memory_space<vmem>>, vector<8x32xf32>
    %c0_1 = arith.constant 0 : index
    %c0_2 = arith.constant 0 : index
    %1 = vector.load %arg3[%c0_1, %c0_2] : memref<1x32xf32, #tpu.memory_space<vmem>>, vector<1x32xf32>
    %2 = vector.broadcast %1 : vector<1x32xf32> to vector<8x32xf32>
    %3 = arith.mulf %0, %2 : vector<8x32xf32>
    %cst = arith.constant dense<0.000000e+00> : vector<8xf32>
    %4 = vector.multi_reduction <add>, %3, %cst [1] : vector<8x32xf32> to vector<8xf32>
    %5 = vector.shape_cast %4 : vector<8xf32> to vector<8x1xf32>
    %c0_3 = arith.constant 0 : index
    %6 = memref.load %arg1[%c0_3] : memref<1xf32, #tpu.memory_space<smem>>
    %7 = vector.broadcast %6 : f32 to vector<8x1xf32>
    %8 = arith.addf %5, %7 : vector<8x1xf32>
    %c0_4 = arith.constant 0 : index
    %c0_5 = arith.constant 0 : index
    %9 = vector.load %arg4[%c0_4, %c0_5] : memref<8x1xf32, #tpu.memory_space<vmem>>, vector<8x1xf32>
    tpu.vector_store %arg4[%c0_4, %c0_5], %8 {strides = array<i32>} : memref<8x1xf32, #tpu.memory_space<vmem>>, vector<8x1xf32>,
    return
  }
  func.func @transform_0(%arg0: i32, %arg1: memref<1xf32, #tpu.memory_space<smem>>) -> (i32, i32) {
    %c0_i32 = arith.constant 0 : i32
    %c0_i32_0 = arith.constant 0 : i32
    return %arg0, %c0_i32 : i32, i32
  }
  func.func @transform_1(%arg0: i32, %arg1: memref<1xf32, #tpu.memory_space<smem>>) -> (i32, i32) {
    %c0_i32 = arith.constant 0 : i32
    %c0_i32_0 = arith.constant 0 : i32
    %c0_i32_1 = arith.constant 0 : i32
    return %c0_i32, %c0_i32_0 : i32, i32
  }
  func.func @transform_2(%arg0: i32, %arg1: memref<1xf32, #tpu.memory_space<smem>>) -> (i32, i32) {
    %c0_i32 = arith.constant 0 : i32
    %c0_i32_0 = arith.constant 0 : i32
    return %arg0, %c0_i32 : i32, i32
  }
}

</mosaic_0001>

<bundles_post_ra>
// kernel: tpu_custom_call.1
= control target key start
LH: loop header
LB: loop body
LE: loop exit
PB: predicated region body
PF: predicated region fallthrough
CT: control target
= control target key end

     0   :  { %9 = vsyncpa [#allocation5], 0  ;;  %s75_s15 = smov [#allocation4]   ;;  %s108_s0 = inlined_call_operand.<no memory space> [shape: f32[1], index: 0, kind: input, shape index: {}]   ;;  %s109_s1 = inlined_call_operand.hbm [shape: f32[8,32], index: 1, kind: input, shape index: {}]   ;;  %s110_s2 = inlined_call_operand.vmem [shape: f32[1,32], index: 2, kind: input, shape index: {}]   ;;  %s111_s3 = inlined_call_operand.vmem [shape: f32[8,1], index: 3, kind: output, shape index: {}]  }
   0x1   :  { %s15_s14 = sshll.u32 %s109_s1, 4  ;;  %s17_s16 = sshll.u32 %s75_s15, 4  ;;  %s16_s14 = int_to_ptr.hbm [resolvable:$true] %s15_s14  ;;  %s18_s16 = int_to_ptr.vmem [resolvable:$true] %s17_s16 }
   0x2   :  { %20 = dma.hbm_to_vmem [thread:$0]  %s16_s14, 128, %s18_s16, [#allocation5]  }
   0x3   :  { %73 = dma.done.wait [#allocation5], 128  }
   0x4   :  { %74 = vsyncadd [#allocation5], 4294967168  ;;  %v27_v0 = vld [vmem:[#allocation4] sm:$0xff]  ;;  %vm33_vm0 = vcmask 261120   ;;  %v38_v4 = vstv %s108_s0  ;;  %vm40_vm1 = vcmask 7168  }
   0x5   :  { %v48_v1 = vld [vmem:[%s110_s2] ss:$0 sm:$0xff] }
   0x6   :  { %v32_v2 = vmul.f32 %v48_v1, %v27_v0 }
   0x8   :  { %v34_v3 = vsel %vm33_vm0, %v32_v2, 0.0 }
   0x9   :  { %35 = vadd.xlane.f32.xlu0 %v34_v3 }
  0x7c   :  { %v36_v5 = vpop.xlane.xlu0 %35 }
  0x7d   :  { %v39_v6 = vadd.f32 %v38_v4, %v36_v5 }
  0x7f   :  { %41 = vst.msk [vmem:[%s111_s3] sm:$0xff] %vm40_vm1, %v39_v6 }
  0x80   :  { %46 = vsyncpa [#allocation5], 1 }

</bundles_post_ra>
